<compile_context>
chip_gen: v5e
topology: v5e:2x2
jax: 0.10.0
libtpu: 0.0.40
codegen_flags: <defaults>
</compile_context>

<pallas_src>
import jax
import jax.numpy as jnp
from jax.experimental import pallas as pl
from jax.experimental.pallas import tpu as pltpu

MAX_TILE_T = 256  # output-frame tile (multiple of 8; sized for v7x's 64 MiB VMEM too)


def _round_up(x, m):
    return (x + m - 1) // m * m


# ----------------------------- Pallas kernels ------------------------------

def _conv_relu_tile(x_ref, w_ref, b_ref, *, ctx, stride, dilation, tile_t):
    """Conv1d + bias + ReLU for one (tile_t, C_pad) output tile.

    x_ref : (T_in_pad, D)    one batch, full (padded) time extent, resident in VMEM
    w_ref : (ctx, D, C_pad)  Conv1d weight, transposed and channel-padded
    b_ref : (1, C_pad)
    """
    t0 = pl.program_id(1) * tile_t
    base = pl.multiple_of(t0 * stride, 8)   # tile_t is a multiple of 8
    acc = None
    for k in range(ctx):                    # small static unroll over the context window
        start = base + k * dilation
        if stride == 1:
            xk = x_ref[pl.ds(start, tile_t), :]
        else:
            xk = x_ref[pl.ds(start, tile_t, stride), :]
        d = jnp.dot(xk, w_ref[k], preferred_element_type=jnp.float32)
        acc = d if acc is None else acc + d
    return jnp.maximum(acc + b_ref[...], 0.0)


def _make_stats_kernel(ctx, stride, dilation, tile_t, t_out):
    """Fused conv+ReLU+masked per-channel sum / sum-of-squares (BatchNorm batch stats)."""
    def kernel(x_ref, w_ref, b_ref, sum_ref, sq_ref):
        is_first = (pl.program_id(0) == 0) & (pl.program_id(1) == 0)

        @pl.when(is_first)
        def _():
            sum_ref[...] = jnp.zeros_like(sum_ref)
            sq_ref[...] = jnp.zeros_like(sq_ref)

        y = _conv_relu_tile(x_ref, w_ref, b_ref, ctx=ctx, stride=stride,
                            dilation=dilation, tile_t=tile_t)
        rows = pl.program_id(1) * tile_t + jax.lax.broadcasted_iota(jnp.int32, y.shape, 0)
        ym = jnp.where(rows < t_out, y, 0.0)          # mask padded output frames
        # Accumulate into (8, C_pad): cross-vreg adds only (VPU); the single cross-sublane
        # reduce is deferred to the host.
        ym3 = ym.reshape(tile_t // 8, 8, y.shape[-1])
        sum_ref[...] += jnp.sum(ym3, axis=0)
        sq_ref[...] += jnp.sum(ym3 * ym3, axis=0)
    return kernel


def _make_conv_bn_kernel(ctx, stride, dilation, tile_t):
    """Fused conv+ReLU+BatchNorm-apply (y*scale + offset), single HBM write."""
    def kernel(x_ref, w_ref, b_ref, scale_ref, off_ref, o_ref):
        y = _conv_relu_tile(x_ref, w_ref, b_ref, ctx=ctx, stride=stride,
                            dilation=dilation, tile_t=tile_t)
        o_ref[...] = y * scale_ref[...] + off_ref[...]
    return kernel


# ------------------------------ Host wrapper -------------------------------

def tdnn_forward(x, weight, bias, gamma, beta, *, context_size, stride=1,
                 dilation=1, padding=0, eps=1e-5, batch_norm=True):
    """x: (batch, seq_len, input_dim) -> (batch, new_seq_len, output_dim).

    Matches TDNNLayer.forward in training mode (dropout p=0 is identity, BN uses
    batch statistics).
    """
    B, T, D = x.shape
    C_out = weight.shape[0]
    C_pad = _round_up(C_out, 128)            # lane-dense channel dim

    x = x.astype(jnp.float32)
    if padding > 0:                          # Conv1d length padding
        x = jnp.pad(x, ((0, 0), (padding, padding), (0, 0)))
    T_c = T + 2 * padding
    T_out = (T_c - dilation * (context_size - 1) - 1) // stride + 1
    assert T_out > 0, "sequence too short for this context/stride/dilation"

    tile_t = min(MAX_TILE_T, _round_up(T_out, 8))
    T_out_pad = _round_up(T_out, tile_t)
    # input time extent needed so every in-kernel shifted slice stays in bounds
    T_need = (T_out_pad - 1) * stride + (context_size - 1) * dilation + 1
    T_in_pad = max(T_c, T_need)
    if T_in_pad > T_c:
        x = jnp.pad(x, ((0, 0), (0, T_in_pad - T_c), (0, 0)))

    # Conv1d weight (C_out, D, ctx) -> (ctx, D, C_pad); bias -> (1, C_pad)
    w = jnp.transpose(weight.astype(jnp.float32), (2, 1, 0))         # (ctx, D, C_out)
    w = jnp.pad(w, ((0, 0), (0, 0), (0, C_pad - C_out)))
    b2 = jnp.pad(bias.astype(jnp.float32).reshape(1, C_out),
                 ((0, 0), (0, C_pad - C_out)))

    grid = (B, T_out_pad // tile_t)
    x_spec = pl.BlockSpec((None, T_in_pad, D), lambda b, t: (b, 0, 0))      # per-batch resident
    w_spec = pl.BlockSpec((context_size, D, C_pad), lambda b, t: (0, 0, 0))  # resident
    vec_spec = pl.BlockSpec((1, C_pad), lambda b, t: (0, 0))                 # resident

    if batch_norm:
        # --- pass 1: fused conv+ReLU+batch statistics (no activation HBM round-trip) ---
        sum8, sq8 = pl.pallas_call(
            _make_stats_kernel(context_size, stride, dilation, tile_t, T_out),
            out_shape=(jax.ShapeDtypeStruct((8, C_pad), jnp.float32),
                       jax.ShapeDtypeStruct((8, C_pad), jnp.float32)),
            grid=grid,
            in_specs=[x_spec, w_spec, vec_spec],
            out_specs=(pl.BlockSpec((8, C_pad), lambda b, t: (0, 0)),
                       pl.BlockSpec((8, C_pad), lambda b, t: (0, 0))),
            compiler_params=pltpu.CompilerParams(
                dimension_semantics=("arbitrary", "arbitrary")),
        )(x, w, b2)

        n = B * T_out
        ssum = jnp.sum(sum8, axis=0, keepdims=True)
        ssq = jnp.sum(sq8, axis=0, keepdims=True)
        mean = ssum / n
        var = jnp.maximum(ssq / n - mean * mean, 0.0)   # clamp: cancellation safety
        g = jnp.pad(gamma.astype(jnp.float32).reshape(1, C_out),
                    ((0, 0), (0, C_pad - C_out)))
        bt = jnp.pad(beta.astype(jnp.float32).reshape(1, C_out),
                     ((0, 0), (0, C_pad - C_out)))
        scale = g * jax.lax.rsqrt(var + eps)
        offset = bt - mean * scale
    else:
        scale = jnp.ones((1, C_pad), jnp.float32)
        offset = jnp.zeros((1, C_pad), jnp.float32)

    # --- pass 2: fused conv+ReLU+BN-apply -> single lane-dense HBM write ---
    out = pl.pallas_call(
        _make_conv_bn_kernel(context_size, stride, dilation, tile_t),
        out_shape=jax.ShapeDtypeStruct((B, T_out_pad, C_pad), jnp.float32),
        grid=grid,
        in_specs=[x_spec, w_spec, vec_spec, vec_spec, vec_spec],
        out_specs=pl.BlockSpec((None, tile_t, C_pad), lambda b, t: (b, t, 0)),
        compiler_params=pltpu.CompilerParams(
            dimension_semantics=("parallel", "parallel")),
    )(x, w, b2, scale, offset)

    # TODO(synk): on v7x, add a per-core split of the stats accumulation so the
    # reduction pass also shards across both TensorCores.
    return out[:, :T_out, :C_out]


# -------------------------------- Reference --------------------------------

def tdnn_reference(x, weight, bias, gamma, beta, *, context_size, stride=1,
                   dilation=1, padding=0, eps=1e-5, batch_norm=True):
    x_t = jnp.transpose(x, (0, 2, 1))  # (B, D, T) == PyTorch NCW
    y = jax.lax.conv_general_dilated(
        x_t, weight, window_strides=(stride,), padding=[(padding, padding)],
        rhs_dilation=(dilation,), dimension_numbers=("NCH", "OIH", "NCH"))
    y = y + bias[None, :, None]
    y = jnp.maximum(y, 0.0)
    if batch_norm:
        mean = jnp.mean(y, axis=(0, 2), keepdims=True)
        var = jnp.var(y, axis=(0, 2), keepdims=True)
        y = (y - mean) * jax.lax.rsqrt(var + eps) * gamma[None, :, None] + beta[None, :, None]
    return jnp.transpose(y, (0, 2, 1))


# ---------------------------------- Main -----------------------------------

if __name__ == "__main__":
    # Small shapes consistent with the module's forward: (batch, seq_len, input_dim)
    B, T, D = 2, 16, 16
    C_OUT, CTX, STRIDE, DIL, PAD = 32, 5, 1, 1, 0

    key = jax.random.PRNGKey(0)
    kx, kw, kb, kg, kbeta = jax.random.split(key, 5)

    x = jax.random.normal(kx, (B, T, D), dtype=jnp.float32)
    weight = 0.1 * jax.random.normal(kw, (C_OUT, D, CTX), dtype=jnp.float32)  # Conv1d weight
    bias = 0.1 * jax.random.normal(kb, (C_OUT,), dtype=jnp.float32)
    gamma = 1.0 + 0.1 * jax.random.normal(kg, (C_OUT,), dtype=jnp.float32)    # BN weight
    beta = 0.1 * jax.random.normal(kbeta, (C_OUT,), dtype=jnp.float32)        # BN bias

    out = tdnn_forward(x, weight, bias, gamma, beta, context_size=CTX,
                       stride=STRIDE, dilation=DIL, padding=PAD)
    out = jax.block_until_ready(out)

    ref = tdnn_reference(x, weight, bias, gamma, beta, context_size=CTX,
                         stride=STRIDE, dilation=DIL, padding=PAD)

    T_OUT = (T + 2 * PAD - DIL * (CTX - 1) - 1) // STRIDE + 1
    assert out.shape == (B, T_OUT, C_OUT), out.shape
    assert jnp.allclose(out, ref, atol=1e-4, rtol=1e-4), float(jnp.max(jnp.abs(out - ref)))
    print("KERNEL_OK")
</pallas_src>

<mosaic_0001>
module attributes {stable_mosaic.version = 11 : i64} {
  func.func @kernel(%arg0: i32, %arg1: i32, %arg2: memref<1x20x16xf32, #tpu.memory_space<vmem>>, %arg3: memref<5x16x128xf32, #tpu.memory_space<vmem>>, %arg4: memref<1x128xf32, #tpu.memory_space<vmem>>, %arg5: memref<8x128xf32, #tpu.memory_space<vmem>>, %arg6: memref<8x128xf32, #tpu.memory_space<vmem>>) attributes {dimension_semantics = [#tpu.dimension_semantics<arbitrary>, #tpu.dimension_semantics<arbitrary>], iteration_bounds = array<i64: 2, 1>, scalar_prefetch = 0 : i64, scratch_operands = 0 : i64, tpu.core_type = #tpu.core_type<tc>, window_params = [{transform_indices = @transform_0, window_bounds = array<i64: 1, 20, 16>}, {pipeline_mode = #tpu.pipeline_mode<synchronous>, transform_indices = @transform_1, window_bounds = array<i64: 5, 16, 128>}, {pipeline_mode = #tpu.pipeline_mode<synchronous>, transform_indices = @transform_2, window_bounds = array<i64: 1, 128>}, {pipeline_mode = #tpu.pipeline_mode<synchronous>, transform_indices = @transform_3, window_bounds = array<i64: 8, 128>}, {pipeline_mode = #tpu.pipeline_mode<synchronous>, transform_indices = @transform_4, window_bounds = array<i64: 8, 128>}]} {
    %c0_i32 = arith.constant 0 : i32
    %0 = arith.cmpi eq, %arg0, %c0_i32 : i32
    %c0_i32_0 = arith.constant 0 : i32
    %1 = arith.cmpi eq, %arg1, %c0_i32_0 : i32
    %2 = arith.andi %0, %1 : i1
    %3 = arith.extui %2 : i1 to i32
    %c0_i32_1 = arith.constant 0 : i32
    %4 = arith.cmpi ne, %3, %c0_i32_1 : i32
    scf.if %4 {
      %cst_43 = arith.constant 0.000000e+00 : f32
      %70 = vector.broadcast %cst_43 : f32 to vector<8x128xf32>
      %c0_44 = arith.constant 0 : index
      %c0_45 = arith.constant 0 : index
      %71 = vector.load %arg5[%c0_44, %c0_45] : memref<8x128xf32, #tpu.memory_space<vmem>>, vector<8x128xf32>
      tpu.vector_store %arg5[%c0_44, %c0_45], %70 {strides = array<i32>} : memref<8x128xf32, #tpu.memory_space<vmem>>, vector<8x128xf32>,
      %cst_46 = arith.constant 0.000000e+00 : f32
      %72 = vector.broadcast %cst_46 : f32 to vector<8x128xf32>
      %c0_47 = arith.constant 0 : index
      %c0_48 = arith.constant 0 : index
      %73 = vector.load %arg6[%c0_47, %c0_48] : memref<8x128xf32, #tpu.memory_space<vmem>>, vector<8x128xf32>
      tpu.vector_store %arg6[%c0_47, %c0_48], %72 {strides = array<i32>} : memref<8x128xf32, #tpu.memory_space<vmem>>, vector<8x128xf32>,
    } else {
    }
    %c16_i32 = arith.constant 16 : i32
    %5 = arith.muli %arg1, %c16_i32 : i32
    %c1_i32 = arith.constant 1 : i32
    %6 = arith.muli %5, %c1_i32 : i32
    %7 = tpu.assume_multiple %6, 8 : i32
    %c0_i32_2 = arith.constant 0 : i32
    %8 = arith.addi %7, %c0_i32_2 : i32
    %c0 = arith.constant 0 : index
    %9 = arith.index_cast %8 : i32 to index
    %c0_3 = arith.constant 0 : index
    %10 = vector.load %arg2[%c0, %9, %c0_3] : memref<1x20x16xf32, #tpu.memory_space<vmem>>, vector<1x16x16xf32>
    %11 = vector.shape_cast %10 : vector<1x16x16xf32> to vector<16x16xf32>
    %c0_4 = arith.constant 0 : index
    %c0_5 = arith.constant 0 : index
    %c0_6 = arith.constant 0 : index
    %12 = vector.load %arg3[%c0_4, %c0_5, %c0_6] : memref<5x16x128xf32, #tpu.memory_space<vmem>>, vector<1x16x128xf32>
    %13 = vector.shape_cast %12 : vector<1x16x128xf32> to vector<16x128xf32>
    %cst = arith.constant dense<0.000000e+00> : vector<16x128xf32>
    %14 = tpu.matmul %11, %13, %cst {dimension_numbers = #tpu.dot_dimension_numbers<[1], [0], [0], [1], [0, 0, 1, 1], [], []>} : vector<16x16xf32>, vector<16x128xf32>, vector<16x128xf32> -> vector<16x128xf32>
    %c1_i32_7 = arith.constant 1 : i32
    %15 = arith.addi %7, %c1_i32_7 : i32
    %c0_8 = arith.constant 0 : index
    %16 = arith.index_cast %15 : i32 to index
    %c0_9 = arith.constant 0 : index
    %17 = vector.load %arg2[%c0_8, %16, %c0_9] : memref<1x20x16xf32, #tpu.memory_space<vmem>>, vector<1x16x16xf32>
    %18 = vector.shape_cast %17 : vector<1x16x16xf32> to vector<16x16xf32>
    %c1 = arith.constant 1 : index
    %c0_10 = arith.constant 0 : index
    %c0_11 = arith.constant 0 : index
    %19 = vector.load %arg3[%c1, %c0_10, %c0_11] : memref<5x16x128xf32, #tpu.memory_space<vmem>>, vector<1x16x128xf32>
    %20 = vector.shape_cast %19 : vector<1x16x128xf32> to vector<16x128xf32>
    %cst_12 = arith.constant dense<0.000000e+00> : vector<16x128xf32>
    %21 = tpu.matmul %18, %20, %cst_12 {dimension_numbers = #tpu.dot_dimension_numbers<[1], [0], [0], [1], [0, 0, 1, 1], [], []>} : vector<16x16xf32>, vector<16x128xf32>, vector<16x128xf32> -> vector<16x128xf32>
    %22 = arith.addf %14, %21 : vector<16x128xf32>
    %c2_i32 = arith.constant 2 : i32
    %23 = arith.addi %7, %c2_i32 : i32
    %c0_13 = arith.constant 0 : index
    %24 = arith.index_cast %23 : i32 to index
    %c0_14 = arith.constant 0 : index
    %25 = vector.load %arg2[%c0_13, %24, %c0_14] : memref<1x20x16xf32, #tpu.memory_space<vmem>>, vector<1x16x16xf32>
    %26 = vector.shape_cast %25 : vector<1x16x16xf32> to vector<16x16xf32>
    %c2 = arith.constant 2 : index
    %c0_15 = arith.constant 0 : index
    %c0_16 = arith.constant 0 : index
    %27 = vector.load %arg3[%c2, %c0_15, %c0_16] : memref<5x16x128xf32, #tpu.memory_space<vmem>>, vector<1x16x128xf32>
    %28 = vector.shape_cast %27 : vector<1x16x128xf32> to vector<16x128xf32>
    %cst_17 = arith.constant dense<0.000000e+00> : vector<16x128xf32>
    %29 = tpu.matmul %26, %28, %cst_17 {dimension_numbers = #tpu.dot_dimension_numbers<[1], [0], [0], [1], [0, 0, 1, 1], [], []>} : vector<16x16xf32>, vector<16x128xf32>, vector<16x128xf32> -> vector<16x128xf32>
    %30 = arith.addf %22, %29 : vector<16x128xf32>
    %c3_i32 = arith.constant 3 : i32
    %31 = arith.addi %7, %c3_i32 : i32
    %c0_18 = arith.constant 0 : index
    %32 = arith.index_cast %31 : i32 to index
    %c0_19 = arith.constant 0 : index
    %33 = vector.load %arg2[%c0_18, %32, %c0_19] : memref<1x20x16xf32, #tpu.memory_space<vmem>>, vector<1x16x16xf32>
    %34 = vector.shape_cast %33 : vector<1x16x16xf32> to vector<16x16xf32>
    %c3 = arith.constant 3 : index
    %c0_20 = arith.constant 0 : index
    %c0_21 = arith.constant 0 : index
    %35 = vector.load %arg3[%c3, %c0_20, %c0_21] : memref<5x16x128xf32, #tpu.memory_space<vmem>>, vector<1x16x128xf32>
    %36 = vector.shape_cast %35 : vector<1x16x128xf32> to vector<16x128xf32>
    %cst_22 = arith.constant dense<0.000000e+00> : vector<16x128xf32>
    %37 = tpu.matmul %34, %36, %cst_22 {dimension_numbers = #tpu.dot_dimension_numbers<[1], [0], [0], [1], [0, 0, 1, 1], [], []>} : vector<16x16xf32>, vector<16x128xf32>, vector<16x128xf32> -> vector<16x128xf32>
    %38 = arith.addf %30, %37 : vector<16x128xf32>
    %c4_i32 = arith.constant 4 : i32
    %39 = arith.addi %7, %c4_i32 : i32
    %c0_23 = arith.constant 0 : index
    %40 = arith.index_cast %39 : i32 to index
    %c0_24 = arith.constant 0 : index
    %41 = vector.load %arg2[%c0_23, %40, %c0_24] : memref<1x20x16xf32, #tpu.memory_space<vmem>>, vector<1x16x16xf32>
    %42 = vector.shape_cast %41 : vector<1x16x16xf32> to vector<16x16xf32>
    %c4 = arith.constant 4 : index
    %c0_25 = arith.constant 0 : index
    %c0_26 = arith.constant 0 : index
    %43 = vector.load %arg3[%c4, %c0_25, %c0_26] : memref<5x16x128xf32, #tpu.memory_space<vmem>>, vector<1x16x128xf32>
    %44 = vector.shape_cast %43 : vector<1x16x128xf32> to vector<16x128xf32>
    %cst_27 = arith.constant dense<0.000000e+00> : vector<16x128xf32>
    %45 = tpu.matmul %42, %44, %cst_27 {dimension_numbers = #tpu.dot_dimension_numbers<[1], [0], [0], [1], [0, 0, 1, 1], [], []>} : vector<16x16xf32>, vector<16x128xf32>, vector<16x128xf32> -> vector<16x128xf32>
    %46 = arith.addf %38, %45 : vector<16x128xf32>
    %c0_28 = arith.constant 0 : index
    %c0_29 = arith.constant 0 : index
    %47 = vector.load %arg4[%c0_28, %c0_29] : memref<1x128xf32, #tpu.memory_space<vmem>>, vector<1x128xf32>
    %48 = vector.broadcast %47 : vector<1x128xf32> to vector<16x128xf32>
    %49 = arith.addf %46, %48 : vector<16x128xf32>
    %cst_30 = arith.constant 0.000000e+00 : f32
    %50 = vector.broadcast %cst_30 : f32 to vector<16x128xf32>
    %51 = arith.maximumf %49, %50 : vector<16x128xf32>
    %c16_i32_31 = arith.constant 16 : i32
    %52 = arith.muli %arg1, %c16_i32_31 : i32
    %53 = tpu.iota {dimensions = array<i32: 0>} : vector<16x128xi32>
    %54 = vector.broadcast %52 : i32 to vector<16x128xi32>
    %55 = arith.addi %54, %53 : vector<16x128xi32>
    %c12_i32 = arith.constant 12 : i32
    %56 = vector.broadcast %c12_i32 : i32 to vector<16x128xi32>
    %57 = arith.cmpi slt, %55, %56 : vector<16x128xi32>
    %cst_32 = arith.constant 0.000000e+00 : f32
    %58 = vector.broadcast %cst_32 : f32 to vector<16x128xf32>
    %59 = arith.select %57, %51, %58 : vector<16x128xi1>, vector<16x128xf32>
    %60 = vector.shape_cast %59 : vector<16x128xf32> to vector<2x8x128xf32>
    %c0_33 = arith.constant 0 : index
    %c0_34 = arith.constant 0 : index
    %61 = vector.load %arg5[%c0_33, %c0_34] : memref<8x128xf32, #tpu.memory_space<vmem>>, vector<8x128xf32>
    %cst_35 = arith.constant dense<0.000000e+00> : vector<8x128xf32>
    %62 = vector.multi_reduction <add>, %60, %cst_35 [0] : vector<2x8x128xf32> to vector<8x128xf32>
    %63 = arith.addf %61, %62 : vector<8x128xf32>
    %c0_36 = arith.constant 0 : index
    %c0_37 = arith.constant 0 : index
    %64 = vector.load %arg5[%c0_36, %c0_37] : memref<8x128xf32, #tpu.memory_space<vmem>>, vector<8x128xf32>
    tpu.vector_store %arg5[%c0_36, %c0_37], %63 {strides = array<i32>} : memref<8x128xf32, #tpu.memory_space<vmem>>, vector<8x128xf32>,
    %c0_38 = arith.constant 0 : index
    %c0_39 = arith.constant 0 : index
    %65 = vector.load %arg6[%c0_38, %c0_39] : memref<8x128xf32, #tpu.memory_space<vmem>>, vector<8x128xf32>
    %66 = arith.mulf %60, %60 : vector<2x8x128xf32>
    %cst_40 = arith.constant dense<0.000000e+00> : vector<8x128xf32>
    %67 = vector.multi_reduction <add>, %66, %cst_40 [0] : vector<2x8x128xf32> to vector<8x128xf32>
    %68 = arith.addf %65, %67 : vector<8x128xf32>
    %c0_41 = arith.constant 0 : index
    %c0_42 = arith.constant 0 : index
    %69 = vector.load %arg6[%c0_41, %c0_42] : memref<8x128xf32, #tpu.memory_space<vmem>>, vector<8x128xf32>
    tpu.vector_store %arg6[%c0_41, %c0_42], %68 {strides = array<i32>} : memref<8x128xf32, #tpu.memory_space<vmem>>, vector<8x128xf32>,
    return
  }
  func.func @transform_0(%arg0: i32, %arg1: i32) -> (i32, i32, i32) {
    %c0_i32 = arith.constant 0 : i32
    %c0_i32_0 = arith.constant 0 : i32
    %c0_i32_1 = arith.constant 0 : i32
    return %arg0, %c0_i32, %c0_i32_0 : i32, i32, i32
  }
  func.func @transform_1(%arg0: i32, %arg1: i32) -> (i32, i32, i32) {
    %c0_i32 = arith.constant 0 : i32
    %c0_i32_0 = arith.constant 0 : i32
    %c0_i32_1 = arith.constant 0 : i32
    %c0_i32_2 = arith.constant 0 : i32
    return %c0_i32, %c0_i32_0, %c0_i32_1 : i32, i32, i32
  }
  func.func @transform_2(%arg0: i32, %arg1: i32) -> (i32, i32) {
    %c0_i32 = arith.constant 0 : i32
    %c0_i32_0 = arith.constant 0 : i32
    %c0_i32_1 = arith.constant 0 : i32
    return %c0_i32, %c0_i32_0 : i32, i32
  }
  func.func @transform_3(%arg0: i32, %arg1: i32) -> (i32, i32) {
    %c0_i32 = arith.constant 0 : i32
    %c0_i32_0 = arith.constant 0 : i32
    %c0_i32_1 = arith.constant 0 : i32
    return %c0_i32, %c0_i32_0 : i32, i32
  }
  func.func @transform_4(%arg0: i32, %arg1: i32) -> (i32, i32) {
    %c0_i32 = arith.constant 0 : i32
    %c0_i32_0 = arith.constant 0 : i32
    %c0_i32_1 = arith.constant 0 : i32
    return %c0_i32, %c0_i32_0 : i32, i32
  }
}

</mosaic_0001>

<bundles_post_ra>
// kernel: tpu_custom_call.1
= control target key start
LH: loop header
LB: loop body
LE: loop exit
PB: predicated region body
PF: predicated region fallthrough
CT: control target
= control target key end

     0   :  { %10 = vsyncpa [#allocation3], 0  ;;  %s820_s0 = inlined_call_operand.vmem [shape: f32[2,20,16], index: 0, kind: input, shape index: {}]   ;;  %s821_s1 = inlined_call_operand.vmem [shape: f32[5,16,128], index: 1, kind: input, shape index: {}]   ;;  %s822_s2 = inlined_call_operand.vmem [shape: f32[1,128], index: 2, kind: input, shape index: {}]   ;;  %s823_s3 = inlined_call_operand.hbm [shape: f32[8,128], index: 3, kind: output, shape index: {0}]   ;;  %s824_s4 = inlined_call_operand.hbm [shape: f32[8,128], index: 4, kind: output, shape index: {1}]  }
   0x1   :  { %11 = vsyncpa [#allocation5], 0  ;;  %s710_s15 = smov 0   ;;  %s712_s16 = smov 0  }
   0x2   :  { %s714_s17 = smov 0  }
   0x3 LB: > { %s512_s18 = sadd.s32 4294967295, %s680_s17   ;;  %s29_s19 = sadd.s32 1, %s676_s16  ;;  %s680_s17 = sphi %s714_s17, %s17_s17   ;;  %s676_s16 = sphi %s712_s16, %s827_s16   ;;  %s672_s15 = sphi %s710_s15, %s826_s15  }
   0x4   : > { %p31_p0 = scmp.ge.s32.totalorder %s29_s19, 2  ;;  %p515_p1 = scmp.ge.s32.totalorder %s680_s17, 1 }
   0x5   : > { %p169_p2 = scmp.lt.s32.totalorder %s680_s17, 3 }
   0x6   : > { %s829_s19 = smov (%p31_p0, %s29_s19), 0 }
   0x7   : > { %p170_p3 = pnand %p515_p1, %p169_p2 }
   0x8   : > { %p190_p4 = scmp.lt.s32.totalorder (!%p170_p3), %s672_s15, 1  ;;  %p195_p5 = scmp.eq.s32.totalorder (!%p170_p3), %s672_s15, 0 }
   0x9   : > { %173 = sbr.rel (%p170_p3) target bundleno = 190 (0xbe), region = 32 }
   0xe   : > { %s831_s15 = smov (!%p190_p4, %s672_s15), 1  ;;  %200 = sbr.rel (!%p195_p5) target bundleno = 19 (0x13), region = 36  ;;  %v682_v0 = vmov (%p195_p5), 0.0  }
   0xf   : > { %s553_s20 = smul.u32 24, %s831_s15  ;;  %201 = vst [vmem:[#allocation2] sm:$0xff] (%p195_p5), %v682_v0 }
  0x10   : > { %202 = vst [vmem:[#allocation4] sm:$0xff] (%p195_p5), %v682_v0 }
  0x11   : > { %s732_s23 = scalar_lea.vmem %s820_s0, %s553_s20 }
  0x13 PF: > { %v521_v1 = vld [vmem:[%s821_s1 + $0x18] sm:$0xff]  ;;  %v520_v2 = vld [vmem:[%s821_s1 + $0x10] sm:$0xff]  ;;  %vm216_vm0 = vcmask 130048   ;;  %v529_v4 = vld [vmem:[%s821_s1 + $0x28] sm:$0xff]  ;;  %v397_v30 = vlaneseq  ;;  %s425_s28 = sshll.u32 %s823_s3, 4  ;;  %p792_p6 = scmp.eq.s32.totalorder %s512_s18, 1  ;;  %s426_s28 = int_to_ptr.hbm [resolvable:$true] %s425_s28 }
  0x14   : > { %551 = vmatpush.msra.mxu1 %v521_v1  ;;  %v519_v3 = vld [vmem:[%s732_s23 + $0x9] sm:$0xff]  ;;  %237 = vmatpush.msra.mxu0 %v521_v1  ;;  %v528_v5 = vld [vmem:[%s821_s1 + $0x20] sm:$0xff]  ;;  %v535_v7 = vld [vmem:[%s821_s1 + $0x38] sm:$0xff]  ;;  %s684_s30 = smov [#allocation4]   ;;  %s437_s8 = sshll.u32 %s824_s4, 4  ;;  %s438_s8 = int_to_ptr.hbm [resolvable:$true] %s437_s8 }
  0x15   : > { %v208_v6 = vld [vmem:[%s821_s1 + $0x8] sm:$0xff]  ;;  %302 = vmatpush.msra.mxu2 %v529_v4  ;;  %340 = vmatpush.msra.mxu3 %v535_v7  ;;  %v534_v9 = vld [vmem:[%s821_s1 + $0x30] sm:$0xff]  ;;  %v207_v10 = vld [vmem:[%s821_s1] sm:$0xff]  ;;  %v398_v37 = vshrl.u32 %v397_v30, 7  ;;  %s435_s5 = sshll.u32 %s684_s30, 4  ;;  %s436_s5 = int_to_ptr.vmem [resolvable:$true] %s435_s5 }
  0x16   : > { %v526_v8 = vld [vmem:[%s732_s23 + $0x2] sm:$0xff]  ;;  %552 = vmatpush.msra.mxu1 %v520_v2  ;;  %238 = vmatpush.msra.mxu0 %v520_v2  ;;  %v527_v16 = vld [vmem:[%s732_s23 + $0xa] sm:$0xff]  ;;  %v593_v35 = vld [vmem:[%s822_s2] ss:$0 sm:$0xff] }
  0x17   : > { %523 = vmatmul.msk.f32.vlgmr.msra.gmra.mxu1 %vm216_vm0, %v519_v3  ;;  %303 = vmatpush.msra.mxu2 %v528_v5  ;;  %v518_v11 = vld [vmem:[%s732_s23 + $0x1] sm:$0xff]  ;;  %v533_v18 = vld [vmem:[%s732_s23 + $0xb] sm:$0xff]  ;;  %v399_v42 = vadd.s32 8, %v398_v37 }
  0x18   : > { %266 = vmatpush.msrb.mxu1 %v208_v6  ;;  %530 = vmatmul.msk.f32.vlgmr.msra.gmra.mxu2 %vm216_vm0, %v526_v8  ;;  %v532_v12 = vld [vmem:[%s732_s23 + $0x3] sm:$0xff]  ;;  %v539_v20 = vld [vmem:[%s732_s23 + $0xc] sm:$0xff] }
  0x19   : > { %v541_v13 = vld [vmem:[%s821_s1 + $0x48] sm:$0xff]  ;;  %341 = vmatpush.msra.mxu3 %v534_v9  ;;  %522 = vmatmul.msk.f32.vlgmr.msra.gmra.mxu0 %vm216_vm0, %v518_v11  ;;  %v540_v14 = vld [vmem:[%s821_s1 + $0x40] sm:$0xff]  ;;  %vm404_vm1 = vcmp.lt.s32.totalorder %v399_v42, 12 }
  0x1a   : > { %267 = vmatpush.msrb.mxu1 %v207_v10  ;;  %536 = vmatmul.msk.f32.vlgmr.msra.gmra.mxu3 %vm216_vm0, %v532_v12  ;;  %v205_v15 = vld [vmem:[%s732_s23] sm:$0xff]  ;;  %v206_v19 = vld [vmem:[%s732_s23 + $0x8] sm:$0xff] }
  0x1b   : > { %378 = vmatpush.msrb.mxu0 %v541_v13  ;;  %v538_v17 = vld [vmem:[%s732_s23 + $0x4] sm:$0xff]  ;;  %s683_s23 = smov [#allocation2]  }
  0x1c   : > { %v407_v48 = vld [vmem:[#allocation2] sm:$0xff]  ;;  %s423_s25 = sshll.u32 %s683_s23, 4  ;;  %v411_v52 = vld [vmem:[#allocation4] sm:$0xff]  ;;  %s424_s25 = int_to_ptr.vmem [resolvable:$true] %s423_s25 }
  0x1d   : > { %379 = vmatpush.msrb.mxu0 %v540_v14 }
  0x1f   : > { %524 = vmatmul.msk.f32.vlgmr.msrb.gmra.mxu1 %vm216_vm0, %v205_v15 }
  0x20   : > { %531 = vmatmul.msk.f32.gmra.mxu2 %vm216_vm0, %v527_v16 }
  0x21   : > { %542 = vmatmul.msk.f32.vlgmr.msrb.gmra.mxu0 %vm216_vm0, %v538_v17 }
  0x22   : > { %537 = vmatmul.msk.f32.gmra.mxu3 %vm216_vm0, %v533_v18 }
  0x27   : > { %525 = vmatmul.msk.f32.gmra.mxu1 %vm216_vm0, %v206_v19 }
  0x29   : > { %543 = vmatmul.msk.f32.gmra.mxu0 %vm216_vm0, %v539_v20 }
  0x94   : > { %v243_v21 = vpop.f32.mrf.mxu1 }
  0x96   : > { %v240_v22 = vpop.f32.mrf.mxu0 }
  0x9b   : > { %v305_v23 = vpop.f32.mrf.mxu2 }
  0x9c   : > { %v269_v24 = vpop.f32.mrf.mxu1 }
  0x9d   : > { %v270_v25 = vadd.f32 %v269_v24, %v240_v22  ;;  %v343_v26 = vpop.f32.mrf.mxu3 }
  0x9e   : > { %v381_v28 = vpop.f32.mrf.mxu0 }
  0x9f   : > { %v311_v27 = vadd.f32 %v305_v23, %v270_v25 }
  0xa1   : > { %v349_v29 = vadd.f32 %v343_v26, %v311_v27 }
  0xa3   : > { %v308_v32 = vpop.f32.mrf.mxu2  ;;  %v387_v34 = vadd.f32 %v381_v28, %v349_v29 }
  0xa4   : > { %v272_v31 = vpop.f32.mrf.mxu1 }
  0xa5   : > { %v273_v33 = vadd.f32 %v272_v31, %v243_v21  ;;  %v346_v36 = vpop.f32.mrf.mxu3  ;;  %v393_v41 = vadd.f32 %v593_v35, %v387_v34 }
  0xa6   : > { %v384_v39 = vpop.f32.mrf.mxu0 }
  0xa7   : > { %v312_v38 = vadd.f32 %v308_v32, %v273_v33  ;;  %v395_v45 = vmax.f32 %v393_v41, 0.0 }
  0xa9   : > { %v350_v40 = vadd.f32 %v346_v36, %v312_v38  ;;  %v412_v49 = vmul.f32 %v395_v45, %v395_v45 }
  0xab   : > { %v388_v43 = vadd.f32 %v384_v39, %v350_v40 }
  0xad   : > { %v394_v44 = vadd.f32 %v593_v35, %v388_v43 }
  0xaf   : > { %v396_v46 = vmax.f32 %v394_v44, 0.0 }
  0xb1   : > { %v406_v47 = vsel %vm404_vm1, %v396_v46, 0.0 }
  0xb2   : > { %v408_v50 = vadd.f32 %v406_v47, %v395_v45  ;;  %v413_v51 = vmul.f32 %v406_v47, %v406_v47 }
  0xb4   : > { %v409_v53 = vadd.f32 %v408_v50, %v407_v48  ;;  %v414_v54 = vadd.f32 %v413_v51, %v412_v49 }
  0xb6   : > { %410 = vst [vmem:[#allocation2] sm:$0xff] %v409_v53  ;;  %v415_v55 = vadd.f32 %v414_v54, %v411_v52 }
  0xb7   : > { %555 = dma.vmem_to_hbm [thread:$0]  (%p792_p6), %s424_s25, 128, %s426_s28, [#allocation3]  }
  0xb8   : > { %416 = vst [vmem:[#allocation4] sm:$0xff] %v415_v55 }
  0xb9   : > { %557 = dma.vmem_to_hbm [thread:$0]  (%p792_p6), %s436_s5, 128, %s438_s8, [#allocation5]  }
  0xba   : > { %663 = dma.done.wait (%p792_p6), [#allocation3], 128  }
  0xbb   : > { %665 = vsyncadd (%p792_p6), [#allocation3], 4294967168 }
  0xbc   : > { %667 = dma.done.wait (%p792_p6), [#allocation5], 128  }
  0xbd   : > { %669 = vsyncadd (%p792_p6), [#allocation5], 4294967168 }
  0xbe PF: > { %s17_s17 = sadd.s32 1, %s680_s17   ;;  %s826_s15 = smov %s676_s16 }
  0xbf   : > { %p14_p7 = scmp.ge.s32.totalorder %s17_s17, 4   ;;  %s827_s16 = smov %s829_s19 }
  0xc1   :  { %16 = sbr.rel (!%p14_p7) target bundleno = 3 (0x3), region = 80 }
  0xc6   :  { %456 = vsyncpa [#allocation3], 1 }
  0xc7   :  { %458 = vsyncpa [#allocation3 + $0x1], 1 }
  0xc8   :  { %459 = vsyncpa [#allocation5], 1 }

</bundles_post_ra>
